<compile_context>
chip_gen: v7x
topology: tpu7x:2x2x1
jax: 0.10.0
libtpu: 0.0.40
codegen_flags: <defaults>
</compile_context>

<pallas_src>
import functools

import numpy as np
import jax
import jax.numpy as jnp
from jax.experimental import pallas as pl
from jax.experimental.pallas import tpu as pltpu


# ----------------------------------------------------------------------------
# small helpers
# ----------------------------------------------------------------------------
def _round_up(x, m):
    return ((x + m - 1) // m) * m


def _pad2(a, rows, cols):
    pr, pc = rows - a.shape[0], cols - a.shape[1]
    if pr == 0 and pc == 0:
        return a
    return jnp.pad(a, ((0, pr), (0, pc)))


def _erf(x):
    # Abramowitz & Stegun 7.1.26 rational approximation (|err| < 1.5e-7, i.e. at
    # f32 resolution), built only from ops with guaranteed Mosaic lowerings.
    a1, a2, a3, a4, a5 = 0.254829592, -0.284496736, 1.421413741, -1.453152027, 1.061405429
    p = 0.3275911
    s = jnp.sign(x)
    z = jnp.abs(x)
    t = 1.0 / (1.0 + p * z)
    poly = ((((a5 * t + a4) * t + a3) * t + a2) * t + a1) * t
    return s * (1.0 - poly * jnp.exp(-z * z))


@functools.lru_cache(maxsize=None)
def _matmul_config():
    """Chip-aware (tm, tn, tk, vmem_limit_bytes) for the tiled matmuls."""
    try:
        cap = pltpu.get_tpu_info().vmem_capacity_bytes
    except Exception:
        cap = 64 * 1024 * 1024                      # conservative (v7x-sized) default
    if cap >= 100 * 1024 * 1024:                    # v5e / v6e: 128 MiB physical VMEM
        return 1024, 1024, 512, min(96 * 1024 * 1024, (cap * 3) // 4)
    # v7x: 64 MiB per TensorCore -> smaller tiles, ~48 MiB scoped limit
    return 512, 512, 512, (cap * 3) // 4


# ----------------------------------------------------------------------------
# fused tiled matmul:  out = epilogue( groupnorm?(x) @ W + b )
# ----------------------------------------------------------------------------
def _make_mm_kernel(has_gn, epilogue):
    inv_sqrt2 = 0.7071067811865476

    def kernel(*refs):
        i = 0
        x_ref = refs[i]; i += 1
        if has_gn:
            mean_ref, rstd_ref, gamma_ref, beta_ref = refs[i:i + 4]
            i += 4
        w_ref, b_ref = refs[i], refs[i + 1]
        i += 2
        if epilogue == "bias_scale_res":
            s_ref, r_ref = refs[i], refs[i + 1]
            i += 2
        o_ref = refs[i]

        @pl.when(pl.program_id(2) == 0)
        def _init():
            o_ref[...] = jnp.zeros_like(o_ref)

        x = x_ref[...].astype(jnp.float32)
        if has_gn:
            # GroupNorm(num_groups=1) prologue fused onto the LHS tile.
            x = (x - mean_ref[...]) * rstd_ref[...]
            x = x * gamma_ref[...].astype(jnp.float32) + beta_ref[...].astype(jnp.float32)

        # bf16 operands -> full-rate MXU, f32 accumulation held in o_ref
        # (its block index ignores k, so the buffer stays resident).
        o_ref[...] += jnp.dot(x.astype(w_ref.dtype), w_ref[...],
                              preferred_element_type=jnp.float32)

        @pl.when(pl.program_id(2) == pl.num_programs(2) - 1)
        def _fin():
            y = o_ref[...] + b_ref[...].astype(jnp.float32)
            if epilogue == "bias_gelu":
                # exact (erf-based) GELU == torch.nn.GELU()
                y = 0.5 * y * (1.0 + _erf(y * inv_sqrt2))
            elif epilogue == "bias_scale_res":
                y = r_ref[...].astype(jnp.float32) + s_ref[...].astype(jnp.float32) * y
            o_ref[...] = y

    return kernel


def fused_matmul(x, w, b, *, gn=None, scale=None, residual=None, epilogue="bias"):
    """Tiled, software-pipelined matmul with fused GN prologue / epilogues.

    gn = (mean_rows [R,1], rstd_rows [R,1], gamma [K], beta [K]) or None.
    Awkward shapes are zero-padded to tile multiples (MXU-friendly, lane-dense
    stores) and the result is sliced back.
    """
    R, K = x.shape
    K2, N = w.shape
    assert K2 == K and b.shape == (N,)
    tm, tn, tk, vmem_limit = _matmul_config()
    bm = min(tm, _round_up(R, 8))
    bn = min(tn, _round_up(N, 128))
    bk = min(tk, _round_up(K, 128))
    Rp, Np, Kp = _round_up(R, bm), _round_up(N, bn), _round_up(K, bk)
    grid = (Rp // bm, Np // bn, Kp // bk)

    in_specs = [pl.BlockSpec((bm, bk), lambda i, j, k: (i, k))]
    inputs = [_pad2(x, Rp, Kp)]
    if gn is not None:
        mean_r, rstd_r, gamma, beta = gn
        in_specs += [pl.BlockSpec((bm, 1), lambda i, j, k: (i, 0)),
                     pl.BlockSpec((bm, 1), lambda i, j, k: (i, 0)),
                     pl.BlockSpec((1, bk), lambda i, j, k: (0, k)),
                     pl.BlockSpec((1, bk), lambda i, j, k: (0, k))]
        inputs += [_pad2(mean_r, Rp, 1), _pad2(rstd_r, Rp, 1),
                   _pad2(gamma.reshape(1, K), 1, Kp),
                   _pad2(beta.reshape(1, K), 1, Kp)]
    in_specs += [pl.BlockSpec((bk, bn), lambda i, j, k: (k, j)),
                 pl.BlockSpec((1, bn), lambda i, j, k: (0, j))]
    inputs += [_pad2(w, Kp, Np), _pad2(b.reshape(1, N), 1, Np)]
    if epilogue == "bias_scale_res":
        assert scale is not None and residual is not None and residual.shape == (R, N)
        in_specs += [pl.BlockSpec((1, bn), lambda i, j, k: (0, j)),
                     pl.BlockSpec((bm, bn), lambda i, j, k: (i, j))]
        inputs += [_pad2(scale.reshape(1, N), 1, Np), _pad2(residual, Rp, Np)]

    out = pl.pallas_call(
        _make_mm_kernel(gn is not None, epilogue),
        out_shape=jax.ShapeDtypeStruct((Rp, Np), jnp.float32),
        grid=grid,
        in_specs=in_specs,
        out_specs=pl.BlockSpec((bm, bn), lambda i, j, k: (i, j)),
        compiler_params=pltpu.CompilerParams(
            dimension_semantics=("parallel", "parallel", "arbitrary"),
            vmem_limit_bytes=vmem_limit),
    )(*inputs)
    if (Rp, Np) != (R, N):
        out = out[:R, :N]
    return out


# ----------------------------------------------------------------------------
# GroupNorm(num_groups=1) statistics: per-sample mean / rstd
# ----------------------------------------------------------------------------
def _gn_stats_kernel(x_ref, mean_ref, rstd_ref, *, eps):
    x = x_ref[0].astype(jnp.float32)                 # [N, C] -- whole sample
    m = jnp.mean(x)
    v = jnp.mean(jnp.square(x - m))                  # biased variance (torch GN)
    r = jax.lax.rsqrt(v + eps)
    mean_ref[...] = jnp.broadcast_to(m, mean_ref.shape)
    rstd_ref[...] = jnp.broadcast_to(r, rstd_ref.shape)


def groupnorm_stats(x_rows, B, N, C, eps=1e-5):
    """Per-sample mean/rstd, expanded to per-row [B*N, 1] for the fused matmuls."""
    # TODO(synk): switch to a two-pass row-tiled reduction if a single sample's
    # N*C block ever approaches the VMEM budget (fine for ClusterBlock stages).
    x_tok = x_rows.reshape(B, N, C)
    mean, rstd = pl.pallas_call(
        functools.partial(_gn_stats_kernel, eps=eps),
        out_shape=(jax.ShapeDtypeStruct((B, 1, 128), jnp.float32),
                   jax.ShapeDtypeStruct((B, 1, 128), jnp.float32)),
        grid=(B,),
        in_specs=[pl.BlockSpec((1, N, C), lambda b: (b, 0, 0))],
        out_specs=(pl.BlockSpec((1, 1, 128), lambda b: (b, 0, 0)),
                   pl.BlockSpec((1, 1, 128), lambda b: (b, 0, 0))),
        compiler_params=pltpu.CompilerParams(dimension_semantics=("parallel",)),
    )(x_tok)
    mean_rows = jnp.repeat(mean[:, 0, 0], N).reshape(B * N, 1)
    rstd_rows = jnp.repeat(rstd[:, 0, 0], N).reshape(B * N, 1)
    return mean_rows, rstd_rows


# ----------------------------------------------------------------------------
# Cluster (token mixer): all heads + all fold_h regions of a strip per step
# ----------------------------------------------------------------------------
def make_cluster_constants(w_sub, h_sub, proposal_w, proposal_h, heads, head_dim):
    M = proposal_w * proposal_h
    P = w_sub * h_sub
    D = head_dim
    # AdaptiveAvgPool2d((proposal_w, proposal_h)) over a (w_sub, h_sub) region as
    # an [M, P] matrix (torch adaptive start/end formula -> exact for any size).
    pool = np.zeros((M, P), np.float32)
    for i in range(proposal_w):
        ws, we = (i * w_sub) // proposal_w, -((-(i + 1) * w_sub) // proposal_w)
        for j in range(proposal_h):
            hs, he = (j * h_sub) // proposal_h, -((-(j + 1) * h_sub) // proposal_h)
            inv = 1.0 / ((we - ws) * (he - hs))
            for wi in range(ws, we):
                for hi in range(hs, he):
                    pool[i * proposal_h + j, wi * h_sub + hi] = inv
    bblk = np.kron(np.eye(heads, dtype=np.float32), np.ones((D, D), np.float32))   # [hd, hd]
    tmat = np.tile(np.eye(M, dtype=np.float32), (heads, 1))                        # [heads*M, M]
    bd = np.kron(np.eye(heads, dtype=np.float32), np.ones((M, D), np.float32))     # [heads*M, hd]
    return (jnp.asarray(pool), jnp.asarray(bblk), jnp.asarray(tmat), jnp.asarray(bd))


def _cluster_kernel(ab_ref, pool_ref, bblk_ref, tmat_ref, bd_ref, fv_ref, o_ref,
                    *, heads, head_dim, num_centers, fold_h):
    alpha = ab_ref[0]
    beta = ab_ref[1]
    w_sub, _, h_sub, two_hd = fv_ref.shape
    hd = heads * head_dim
    M = num_centers
    HM = heads * M
    P = w_sub * h_sub

    A = pool_ref[...]            # [M, P]    adaptive-pool matrix
    Bblk = bblk_ref[...]         # [hd, hd]  per-head block of ones (sum selector)
    T = tmat_ref[...]            # [HM, M]   stacked identities (row tiling)
    BD = bd_ref[...]             # [HM, hd]  block-diagonal head mask

    def mm(a, b_, dims):
        return jax.lax.dot_general(a, b_, (dims, ((), ())),
                                   preferred_element_type=jnp.float32)

    # All fold_h regions of this (batch, fold_w) strip, statically unrolled.
    for j in range(fold_h):
        fv = fv_ref[:, j, :, :].astype(jnp.float32).reshape(P, two_hd)   # [P, 2*hd]
        cc = mm(A, fv, ((1,), (0,)))                                     # f & v centers, one call
        f, v = fv[:, :hd], fv[:, hd:]
        c, vc = cc[:, :hd], cc[:, hd:]

        # per-head L2 normalization (block sums on the MXU, rsqrt on the EUP)
        f_n = f * jax.lax.rsqrt(jnp.maximum(mm(f * f, Bblk, ((1,), (0,))), 1e-24))
        c_n = c * jax.lax.rsqrt(jnp.maximum(mm(c * c, Bblk, ((1,), (0,))), 1e-24))

        # block-diagonally stacked centers -> cos-sim of ALL heads in one matmul
        c_bd = mm(T, c_n, ((1,), (0,))) * BD                             # [HM, hd]
        logits = beta + alpha * mm(c_bd, f_n, ((1,), (1,)))              # [HM, P]
        sim = 1.0 / (1.0 + jnp.exp(-logits))

        # hard assignment: each point keeps its (first) argmax center, per head
        sim3 = sim.reshape(heads, M, P)
        smax = jnp.max(sim3, axis=1, keepdims=True)
        iota = jax.lax.broadcasted_iota(jnp.int32, (heads, M, P), 1).astype(jnp.float32)
        first = jnp.min(jnp.where(sim3 >= smax, iota, float(M)), axis=1, keepdims=True)
        mask = (iota == first).astype(jnp.float32).reshape(HM, P)
        simm = sim * mask

        counts = jnp.sum(mask, axis=-1, keepdims=True)                   # [HM, 1]
        inv_cnt = pl.reciprocal(counts + 1.0, approx=True)               # EUP divide
        agg = (mm(simm, v, ((1,), (0,))) + mm(T, vc, ((1,), (0,)))) * inv_cnt * BD

        # dispatch centers back to points: out[p] = sum_hm simm[hm, p] * agg[hm]
        outp = mm(simm, agg, ((0,), (0,)))                               # [P, hd]
        # TODO(synk): a lane-dense (w_sub, h_sub*hd) store would avoid masked
        # stores when hd < 128, at the price of a lane-merging in-vreg relayout.
        o_ref[:, j, :, :] = outp.reshape(w_sub, h_sub, hd)


def cluster_regions(fv6, consts, sim_alpha, sim_beta, *, heads, head_dim):
    pool_mat, bblk, tmat, bd = consts
    B, fold_w, w_sub, fold_h, h_sub, two_hd = fv6.shape
    hd = heads * head_dim
    assert two_hd == 2 * hd
    M, P = pool_mat.shape
    assert P == w_sub * h_sub
    HM = heads * M
    ab = jnp.concatenate([sim_alpha.reshape(1), sim_beta.reshape(1)]).astype(jnp.float32)

    grid_spec = pltpu.PrefetchScalarGridSpec(
        num_scalar_prefetch=1,                     # sim_alpha/sim_beta in SMEM
        grid=(B, fold_w),
        in_specs=[
            pl.BlockSpec((M, P), lambda b, i, ab: (0, 0)),
            pl.BlockSpec((hd, hd), lambda b, i, ab: (0, 0)),
            pl.BlockSpec((HM, M), lambda b, i, ab: (0, 0)),
            pl.BlockSpec((HM, hd), lambda b, i, ab: (0, 0)),
            pl.BlockSpec((None, None, w_sub, fold_h, h_sub, two_hd),
                         lambda b, i, ab: (b, i, 0, 0, 0, 0)),
        ],
        out_specs=pl.BlockSpec((None, None, w_sub, fold_h, h_sub, hd),
                               lambda b, i, ab: (b, i, 0, 0, 0, 0)),
    )
    return pl.pallas_call(
        functools.partial(_cluster_kernel, heads=heads, head_dim=head_dim,
                          num_centers=M, fold_h=fold_h),
        out_shape=jax.ShapeDtypeStruct((B, fold_w, w_sub, fold_h, h_sub, hd),
                                       jnp.float32),
        grid_spec=grid_spec,
        compiler_params=pltpu.CompilerParams(
            dimension_semantics=("parallel", "parallel")),
    )(ab, pool_mat, bblk, tmat, bd, fv6)


# ----------------------------------------------------------------------------
# ClusterBlock forward
# ----------------------------------------------------------------------------
def cluster_block_forward(x_nchw, params, *, heads, head_dim,
                          fold_w, fold_h, proposal_w, proposal_h):
    B, C, H1, H2 = x_nchw.shape
    N = H1 * H2
    hd = heads * head_dim

    # The Cluster module only folds when BOTH fold factors are > 1 (torch code).
    if not (fold_w > 1 and fold_h > 1):
        fold_w, fold_h = 1, 1
    assert H1 % fold_w == 0 and H2 % fold_h == 0
    w_sub, h_sub = H1 // fold_w, H2 // fold_h

    # TODO(synk): these two boundary transposes vanish if the surrounding model
    # keeps NHWC activations; they stay as XLA glue here to match the NCHW API.
    x_rows = jnp.transpose(x_nchw, (0, 2, 3, 1)).reshape(B * N, C).astype(jnp.float32)

    # bf16 weights (MXU operands); f32 accumulation happens inside the kernels.
    fv_w = jnp.concatenate([params["f_w"], params["v_w"]], axis=1).astype(jnp.bfloat16)
    fv_b = jnp.concatenate([params["f_b"], params["v_b"]])
    proj_w = params["proj_w"].astype(jnp.bfloat16)
    fc1_w = params["fc1_w"].astype(jnp.bfloat16)
    fc2_w = params["fc2_w"].astype(jnp.bfloat16)

    # ---------------- token mixer (Cluster) branch ----------------
    mean1, rstd1 = groupnorm_stats(x_rows, B, N, C)
    gn1 = (mean1, rstd1, params["gn1_w"], params["gn1_b"])
    fv_rows = fused_matmul(x_rows, fv_w, fv_b, gn=gn1, epilogue="bias")   # [B*N, 2*hd]

    # fold into regions: pure row-major reshape, no HBM transpose.
    fv6 = fv_rows.reshape(B, fold_w, w_sub, fold_h, h_sub, 2 * hd)
    consts = make_cluster_constants(w_sub, h_sub, proposal_w, proposal_h, heads, head_dim)
    out6 = cluster_regions(fv6, consts, params["sim_alpha"], params["sim_beta"],
                           heads=heads, head_dim=head_dim)
    o_rows = out6.reshape(B * N, hd)                                      # free reshape

    # proj with fused bias + layer_scale_1 * y + residual epilogue
    x_rows = fused_matmul(o_rows, proj_w, params["proj_b"],
                          scale=params["ls1"], residual=x_rows,
                          epilogue="bias_scale_res")

    # --------------------------- MLP branch ---------------------------
    mean2, rstd2 = groupnorm_stats(x_rows, B, N, C)
    gn2 = (mean2, rstd2, params["gn2_w"], params["gn2_b"])
    h1 = fused_matmul(x_rows, fc1_w, params["fc1_b"], gn=gn2, epilogue="bias_gelu")
    x_rows = fused_matmul(h1, fc2_w, params["fc2_b"],
                          scale=params["ls2"], residual=x_rows,
                          epilogue="bias_scale_res")

    return jnp.transpose(x_rows.reshape(B, H1, H2, C), (0, 3, 1, 2)).astype(x_nchw.dtype)


def init_params(key, dim, heads, head_dim, mlp_ratio=4.0, layer_scale_init_value=1e-5):
    hid = heads * head_dim
    mlp_hidden = int(dim * mlp_ratio)
    ks = jax.random.split(key, 5)

    def w(k, shape):  # trunc_normal_init(std=0.02) analogue, bias=0
        return 0.02 * jax.random.normal(k, shape, dtype=jnp.float32)

    return dict(
        gn1_w=jnp.ones((dim,), jnp.float32), gn1_b=jnp.zeros((dim,), jnp.float32),
        gn2_w=jnp.ones((dim,), jnp.float32), gn2_b=jnp.zeros((dim,), jnp.float32),
        f_w=w(ks[0], (dim, hid)), f_b=jnp.zeros((hid,), jnp.float32),
        v_w=w(ks[1], (dim, hid)), v_b=jnp.zeros((hid,), jnp.float32),
        proj_w=w(ks[2], (hid, dim)), proj_b=jnp.zeros((dim,), jnp.float32),
        sim_alpha=jnp.ones((1,), jnp.float32),
        sim_beta=jnp.zeros((1,), jnp.float32),
        fc1_w=w(ks[3], (dim, mlp_hidden)), fc1_b=jnp.zeros((mlp_hidden,), jnp.float32),
        fc2_w=w(ks[4], (mlp_hidden, dim)), fc2_b=jnp.zeros((dim,), jnp.float32),
        ls1=layer_scale_init_value * jnp.ones((dim,), jnp.float32),
        ls2=layer_scale_init_value * jnp.ones((dim,), jnp.float32),
    )


if __name__ == "__main__":
    # Small shapes consistent with the module (fold 2x2, proposal 2x2).
    B, dim, H, W = 2, 16, 16, 16
    heads, head_dim = 2, 8
    fold_w = fold_h = 2
    proposal_w = proposal_h = 2

    root = jax.random.PRNGKey(0)
    kx, kp = jax.random.split(root)
    x = jax.random.normal(kx, (B, dim, H, W), dtype=jnp.float32)
    params = init_params(kp, dim, heads, head_dim)

    out = cluster_block_forward(
        x, params, heads=heads, head_dim=head_dim,
        fold_w=fold_w, fold_h=fold_h,
        proposal_w=proposal_w, proposal_h=proposal_h)
    out = jax.block_until_ready(out)

    assert out.shape == x.shape, (out.shape, x.shape)
    assert bool(jnp.all(jnp.isfinite(out)))
    print("KERNEL_OK")
</pallas_src>

<mosaic_0001>
module attributes {stable_mosaic.version = 11 : i64} {
  func.func @_gn_stats_kernel(%arg0: i32, %arg1: memref<1x256x16xf32, #tpu.memory_space<vmem>>, %arg2: memref<1x1x128xf32, #tpu.memory_space<vmem>>, %arg3: memref<1x1x128xf32, #tpu.memory_space<vmem>>) attributes {dimension_semantics = [#tpu.dimension_semantics<parallel>], iteration_bounds = array<i64: 2>, scalar_prefetch = 0 : i64, scratch_operands = 0 : i64, tpu.core_type = #tpu.core_type<tc>, window_params = [{transform_indices = @transform_0, window_bounds = array<i64: 1, 256, 16>}, {transform_indices = @transform_1, window_bounds = array<i64: 1, 1, 128>}, {transform_indices = @transform_2, window_bounds = array<i64: 1, 1, 128>}]} {
    %c0 = arith.constant 0 : index
    %c0_0 = arith.constant 0 : index
    %c0_1 = arith.constant 0 : index
    %0 = vector.load %arg1[%c0, %c0_0, %c0_1] : memref<1x256x16xf32, #tpu.memory_space<vmem>>, vector<1x256x16xf32>
    %1 = vector.shape_cast %0 : vector<1x256x16xf32> to vector<256x16xf32>
    %2 = vector.shape_cast %1 : vector<256x16xf32> to vector<1x256x16xf32>
    %cst = arith.constant dense<0.000000e+00> : vector<1xf32>
    %3 = vector.multi_reduction <add>, %2, %cst [1, 2] : vector<1x256x16xf32> to vector<1xf32>
    %4 = vector.shape_cast %3 : vector<1xf32> to vector<1x1x1xf32>
    %5 = vector.extract %4[0, 0, 0] : f32 from vector<1x1x1xf32>
    %cst_2 = arith.constant 4.096000e+03 : f32
    %6 = arith.divf %5, %cst_2 : f32
    %7 = vector.broadcast %6 : f32 to vector<256x16xf32>
    %8 = arith.subf %1, %7 : vector<256x16xf32>
    %9 = arith.mulf %8, %8 : vector<256x16xf32>
    %10 = vector.shape_cast %9 : vector<256x16xf32> to vector<1x256x16xf32>
    %cst_3 = arith.constant dense<0.000000e+00> : vector<1xf32>
    %11 = vector.multi_reduction <add>, %10, %cst_3 [1, 2] : vector<1x256x16xf32> to vector<1xf32>
    %12 = vector.shape_cast %11 : vector<1xf32> to vector<1x1x1xf32>
    %13 = vector.extract %12[0, 0, 0] : f32 from vector<1x1x1xf32>
    %cst_4 = arith.constant 4.096000e+03 : f32
    %14 = arith.divf %13, %cst_4 : f32
    %cst_5 = arith.constant 9.99999974E-6 : f32
    %15 = arith.addf %14, %cst_5 : f32
    %16 = math.rsqrt %15 : f32
    %17 = vector.broadcast %6 : f32 to vector<1x1x128xf32>
    %c0_6 = arith.constant 0 : index
    %c0_7 = arith.constant 0 : index
    %c0_8 = arith.constant 0 : index
    %18 = vector.load %arg2[%c0_6, %c0_7, %c0_8] : memref<1x1x128xf32, #tpu.memory_space<vmem>>, vector<1x1x128xf32>
    tpu.vector_store %arg2[%c0_6, %c0_7, %c0_8], %17 {strides = array<i32>} : memref<1x1x128xf32, #tpu.memory_space<vmem>>, vector<1x1x128xf32>,
    %19 = vector.broadcast %16 : f32 to vector<1x1x128xf32>
    %c0_9 = arith.constant 0 : index
    %c0_10 = arith.constant 0 : index
    %c0_11 = arith.constant 0 : index
    %20 = vector.load %arg3[%c0_9, %c0_10, %c0_11] : memref<1x1x128xf32, #tpu.memory_space<vmem>>, vector<1x1x128xf32>
    tpu.vector_store %arg3[%c0_9, %c0_10, %c0_11], %19 {strides = array<i32>} : memref<1x1x128xf32, #tpu.memory_space<vmem>>, vector<1x1x128xf32>,
    return
  }
  func.func @transform_0(%arg0: i32) -> (i32, i32, i32) {
    %c0_i32 = arith.constant 0 : i32
    %c0_i32_0 = arith.constant 0 : i32
    %c0_i32_1 = arith.constant 0 : i32
    return %arg0, %c0_i32, %c0_i32_0 : i32, i32, i32
  }
  func.func @transform_1(%arg0: i32) -> (i32, i32, i32) {
    %c0_i32 = arith.constant 0 : i32
    %c0_i32_0 = arith.constant 0 : i32
    %c0_i32_1 = arith.constant 0 : i32
    return %arg0, %c0_i32, %c0_i32_0 : i32, i32, i32
  }
  func.func @transform_2(%arg0: i32) -> (i32, i32, i32) {
    %c0_i32 = arith.constant 0 : i32
    %c0_i32_0 = arith.constant 0 : i32
    %c0_i32_1 = arith.constant 0 : i32
    return %arg0, %c0_i32, %c0_i32_0 : i32, i32, i32
  }
}

</mosaic_0001>

<bundles_post_ra>
// kernel: tpu_custom_call.1
= control target key start
LH: loop header
LB: loop body
LE: loop exit
PB: predicated region body
PF: predicated region fallthrough
CT: control target
= control target key end

     0   :  { %8 = vsyncpa [#allocation3], 0  ;;  %s1092_s0 = inlined_call_operand.vmem [shape: f32[2,256,16], index: 0, kind: input, shape index: {}]   ;;  %s1093_s1 = inlined_call_operand.hbm [shape: f32[2,1,128], index: 1, kind: output, shape index: {0}]   ;;  %s1094_s2 = inlined_call_operand.hbm [shape: f32[2,1,128], index: 2, kind: output, shape index: {1}]  }
   0x1   :  { %10 = vsyncpa [#allocation3 + $0x1], 0 }
   0x2   :  { %11 = vsyncpa [#allocation5], 0 }
   0x3   :  { %13 = vsyncpa [#allocation5 + $0x1], 0  ;;  %s695_s9 = smov 0   ;;  %s697_s10 = smov 0  }
   0x4   :  { %s699_s11 = smov 0   ;;  %s701_s12 = smov 0  }
   0x5 LB: > { %s716_s13 = sadd.s32 4294967295, %s676_s12   ;;  %s519_s14 = sadd.s32 4294967294, %s676_s12   ;;  %s676_s12 = sphi %s701_s12, %s1100_s12   ;;  %s672_s11 = sphi %s699_s11, %s1099_s11   ;;  %s668_s10 = sphi %s697_s10, %s1098_s10   ;;  %s664_s9 = sphi %s695_s9, %s1097_s9  }
   0x6   : > { %s720_s15 = sadd.s32 1, %s676_s12   ;;  %s52_s16 = sadd.s32 1, %s672_s11 }
   0x7   : > { %s49_s17 = ssub.s32 %s676_s12, %s720_s15  ;;  %p62_p0 = scmp.ne.s32.totalorder %s672_s11, %s668_s10 }
   0x8   : > { %p50_p1 = scmp.eq.s32.totalorder %s49_s17, 0  ;;  %p63_p2 = scmp.eq.s32.totalorder %s716_s13, 1 }
   0x9   : > { %p68_p3 = scmp.ne.s32.totalorder %s668_s10, %s664_s9  ;;  %p69_p4 = scmp.eq.s32.totalorder %s519_s14, 1 }
   0xa   : > { %s731_s18 = scalar_select %p50_p1, %s672_s11, %s52_s16  }
   0xb   : > { %p733_p5 = por %p63_p2, %p62_p0  ;;  %p737_p6 = por %p69_p4, %p68_p3 }
   0xc   : > { %p522_p7 = scmp.ge.s32.totalorder %s676_s12, 1  ;;  %p121_p8 = scmp.lt.s32.totalorder %s676_s12, 3 }
   0xe   : > { %p122_p9 = pnand %p522_p7, %p121_p8 }
   0xf   : > { %p146_p10 = scmp.lt.s32.totalorder (!%p122_p9), %s716_s13, 1  ;;  %vm183_vm0 = vcmask (!%p122_p9), 130048   ;;  %s911_s26 = sand.u32 (!%p122_p9), 1, %s668_s10  }
  0x10   : > { %125 = sbr.rel (%p122_p9) target bundleno = 661 (0x295), region = 24  ;;  %s139_s29 = scalar_lea.vmem (!%p122_p9), [#allocation2], %s911_s26 }
  0x11   : > { %s525_s30 = sshll.u32 (!%p122_p9), %s716_s13, 4  ;;  %s423_s6 = sshll.u32 (!%p122_p9), %s139_s29, 4  ;;  %s424_s6 = int_to_ptr.vmem [resolvable:$true] %s423_s6 }
  0x12   : > { %s1021_s5 = scalar_lea.hbm (!%p122_p9), %s1093_s1, %s525_s30  ;;  %s407_s7 = scalar_lea.sflag (!%p122_p9), [#allocation3], %s911_s26 }
  0x13   : > { %s582_s8 = scalar_lea.vmem (!%p122_p9), %s424_s6, 16  ;;  %s678_s14 = smov (!%p122_p9), [#allocation2]  }
  0x14   : > { %p583_p11 = scmp.ne.s32.totalorder (!%p122_p9), %s424_s6, %s582_s8  ;;  %s586_s16 = sshll.u32 (!%p122_p9), %s678_s14, 4  ;;  %s587_s16 = int_to_ptr.vmem [resolvable:$false] %s586_s16 }
  0x15   : > { %s588_s17 = scalar_lea.vmem (!%p122_p9), %s587_s16, 32  ;;  %p589_p0 = scmp.lt.s32.totalorder (!%p122_p9), %s424_s6, %s587_s16 }
  0x16   : > { %p584_p12 = pnand (!%p122_p9), %p583_p11, %p733_p5  ;;  %p590_p1 = scmp.lt.s32.totalorder (!%p122_p9), %s588_s17, %s582_s8 }
  0x17   : > { %s147_s21 = scalar_select %p146_p10, %s716_s13, 1 }
  0x18   : > { %p585_p13 = pneg %p584_p12  ;;  %p591_p2 = por %p590_p1, %p589_p0 }
  0x19   : > { %s529_s22 = sshll.u32 %s147_s21, 8 }
  0x1a   : > { %s748_s25 = scalar_lea.vmem %s1092_s0, %s529_s22  ;;  %p592_p3 = pnand %p591_p2, %p585_p13 }
  0x1b   : > { %v751_v0 = vld [vmem:[%s748_s25] sm:$0xff]  ;;  %v754_v1 = vld [vmem:[%s748_s25 + $0x8] sm:$0xff]  ;;  %v757_v2 = vld [vmem:[%s748_s25 + $0x10] sm:$0xff] }
  0x1c   : > { %v760_v3 = vld [vmem:[%s748_s25 + $0x18] sm:$0xff]  ;;  %v184_v4 = vsel %vm183_vm0, %v751_v0, 0.0  ;;  %v185_v5 = vsel %vm183_vm0, %v754_v1, 0.0  ;;  %v187_v6 = vsel %vm183_vm0, %v757_v2, 0.0  ;;  %v769_v7 = vld [vmem:[%s748_s25 + $0x20] sm:$0xff]  ;;  %v774_v10 = vld [vmem:[%s748_s25 + $0x28] sm:$0xff] }
  0x1d   : > { %v186_v8 = vadd.f32 %v185_v5, %v184_v4  ;;  %v189_v9 = vsel %vm183_vm0, %v760_v3, 0.0  ;;  %v191_v12 = vsel %vm183_vm0, %v769_v7, 0.0  ;;  %v779_v13 = vld [vmem:[%s748_s25 + $0x30] sm:$0xff]  ;;  %v193_v15 = vsel %vm183_vm0, %v774_v10, 0.0  ;;  %v784_v16 = vld [vmem:[%s748_s25 + $0x38] sm:$0xff]  ;;  %v789_v19 = vld [vmem:[%s748_s25 + $0x40] sm:$0xff] }
  0x1e   : > { %v195_v18 = vsel %vm183_vm0, %v779_v13, 0.0  ;;  %v197_v21 = vsel %vm183_vm0, %v784_v16, 0.0  ;;  %v794_v22 = vld [vmem:[%s748_s25 + $0x48] sm:$0xff]  ;;  %v199_v24 = vsel %vm183_vm0, %v789_v19, 0.0  ;;  %v799_v25 = vld [vmem:[%s748_s25 + $0x50] sm:$0xff]  ;;  %v804_v28 = vld [vmem:[%s748_s25 + $0x58] sm:$0xff] }
  0x1f   : > { %v188_v11 = vadd.f32 %v187_v6, %v186_v8  ;;  %v201_v27 = vsel %vm183_vm0, %v794_v22, 0.0  ;;  %v203_v30 = vsel %vm183_vm0, %v799_v25, 0.0  ;;  %v809_v31 = vld [vmem:[%s748_s25 + $0x60] sm:$0xff]  ;;  %v205_v33 = vsel %vm183_vm0, %v804_v28, 0.0  ;;  %v814_v34 = vld [vmem:[%s748_s25 + $0x68] sm:$0xff]  ;;  %v819_v37 = vld [vmem:[%s748_s25 + $0x70] sm:$0xff] }
  0x20   : > { %v207_v36 = vsel %vm183_vm0, %v809_v31, 0.0  ;;  %v209_v39 = vsel %vm183_vm0, %v814_v34, 0.0  ;;  %v824_v40 = vld [vmem:[%s748_s25 + $0x78] sm:$0xff]  ;;  %v211_v42 = vsel %vm183_vm0, %v819_v37, 0.0  ;;  %v829_v43 = vld [vmem:[%s748_s25 + $0x80] sm:$0xff]  ;;  %v834_v46 = vld [vmem:[%s748_s25 + $0x88] sm:$0xff] }
  0x21   : > { %v190_v14 = vadd.f32 %v189_v9, %v188_v11  ;;  %v213_v45 = vsel %vm183_vm0, %v824_v40, 0.0  ;;  %v215_v48 = vsel %vm183_vm0, %v829_v43, 0.0  ;;  %v839_v49 = vld [vmem:[%s748_s25 + $0x90] sm:$0xff]  ;;  %v217_v51 = vsel %vm183_vm0, %v834_v46, 0.0  ;;  %v844_v52 = vld [vmem:[%s748_s25 + $0x98] sm:$0xff]  ;;  %v849_v55 = vld [vmem:[%s748_s25 + $0xa0] sm:$0xff] }
  0x22   : > { %v219_v54 = vsel %vm183_vm0, %v839_v49, 0.0  ;;  %v221_v57 = vsel %vm183_vm0, %v844_v52, 0.0  ;;  %v854_v58 = vld [vmem:[%s748_s25 + $0xa8] sm:$0xff]  ;;  %v223_v60 = vsel %vm183_vm0, %v849_v55, 0.0  ;;  %v859_v61 = vld [vmem:[%s748_s25 + $0xb0] sm:$0xff]  ;;  %v864_v4 = vld [vmem:[%s748_s25 + $0xb8] sm:$0xff] }
  0x23   : > { %v192_v17 = vadd.f32 %v191_v12, %v190_v14  ;;  %v225_v63 = vsel %vm183_vm0, %v854_v58, 0.0  ;;  %v227_v6 = vsel %vm183_vm0, %v859_v61, 0.0  ;;  %v869_v8 = vld [vmem:[%s748_s25 + $0xc0] sm:$0xff]  ;;  %v229_v11 = vsel %vm183_vm0, %v864_v4, 0.0  ;;  %v874_v12 = vld [vmem:[%s748_s25 + $0xc8] sm:$0xff] }
  0x25   : > { %v194_v20 = vadd.f32 %v193_v15, %v192_v17  ;;  %v231_v15 = vsel %vm183_vm0, %v869_v8, 0.0  ;;  %v879_v17 = vld [vmem:[%s748_s25 + $0xd0] sm:$0xff] }
  0x27   : > { %v196_v23 = vadd.f32 %v195_v18, %v194_v20  ;;  %v233_v20 = vsel %vm183_vm0, %v874_v12, 0.0 }
  0x29   : > { %v198_v26 = vadd.f32 %v197_v21, %v196_v23  ;;  %v884_v21 = vld [vmem:[%s748_s25 + $0xd8] sm:$0xff] }
  0x2b   : > { %v200_v29 = vadd.f32 %v199_v24, %v198_v26  ;;  %v235_v24 = vsel %vm183_vm0, %v879_v17, 0.0  ;;  %v889_v26 = vld [vmem:[%s748_s25 + $0xe0] sm:$0xff] }
  0x2d   : > { %v202_v32 = vadd.f32 %v201_v27, %v200_v29  ;;  %v237_v29 = vsel %vm183_vm0, %v884_v21, 0.0 }
  0x2f   : > { %v204_v35 = vadd.f32 %v203_v30, %v202_v32  ;;  %v894_v30 = vld [vmem:[%s748_s25 + $0xe8] sm:$0xff] }
  0x31   : > { %v206_v38 = vadd.f32 %v205_v33, %v204_v35  ;;  %v239_v33 = vsel %vm183_vm0, %v889_v26, 0.0  ;;  %v899_v35 = vld [vmem:[%s748_s25 + $0xf0] sm:$0xff] }
  0x33   : > { %v208_v41 = vadd.f32 %v207_v36, %v206_v38  ;;  %v241_v38 = vsel %vm183_vm0, %v894_v30, 0.0 }
  0x35   : > { %v210_v44 = vadd.f32 %v209_v39, %v208_v41  ;;  %v904_v39 = vld [vmem:[%s748_s25 + $0xf8] sm:$0xff] }
  0x37   : > { %v212_v47 = vadd.f32 %v211_v42, %v210_v44  ;;  %v243_v42 = vsel %vm183_vm0, %v899_v35, 0.0 }
  0x39   : > { %v214_v50 = vadd.f32 %v213_v45, %v212_v47  ;;  %v245_v45 = vsel %vm183_vm0, %v904_v39, 0.0 }
  0x3b   : > { %v216_v53 = vadd.f32 %v215_v48, %v214_v50 }
  0x3d   : > { %v218_v56 = vadd.f32 %v217_v51, %v216_v53 }
  0x3f   : > { %v220_v59 = vadd.f32 %v219_v54, %v218_v56 }
  0x41   : > { %v222_v62 = vadd.f32 %v221_v57, %v220_v59 }
  0x43   : > { %v224_v5 = vadd.f32 %v223_v60, %v222_v62 }
  0x45   : > { %v226_v9 = vadd.f32 %v225_v63, %v224_v5 }
  0x47   : > { %v228_v14 = vadd.f32 %v227_v6, %v226_v9 }
  0x49   : > { %v230_v18 = vadd.f32 %v229_v11, %v228_v14 }
  0x4b   : > { %v232_v23 = vadd.f32 %v231_v15, %v230_v18 }
  0x4d   : > { %v234_v27 = vadd.f32 %v233_v20, %v232_v23 }
  0x4f   : > { %v236_v32 = vadd.f32 %v235_v24, %v234_v27 }
  0x51   : > { %v238_v36 = vadd.f32 %v237_v29, %v236_v32 }
  0x53   : > { %v240_v41 = vadd.f32 %v239_v33, %v238_v36 }
  0x55   : > { %v242_v44 = vadd.f32 %v241_v38, %v240_v41 }
  0x57   : > { %v244_v47 = vadd.f32 %v243_v42, %v242_v44 }
  0x59   : > { %v246_v48 = vadd.f32 %v245_v45, %v244_v47 }
  0x5b   : > { %247 = vadd.xlane.f32.xlu0 %v246_v48 }
  0xe8   : > { %v248_v50 = vpop.xlane.xlu0 %247 }
  0xe9   : > { %v249_v51 = vrot.slane %v248_v50, 4 }
  0xeb   : > { %v250_v53 = vadd.f32 %v249_v51, %v248_v50 }
  0xed   : > { %v251_v54 = vrot.slane %v250_v53, 2 }
  0xef   : > { %v252_v56 = vadd.f32 %v251_v54, %v250_v53 }
  0xf1   : > { %v253_v57 = vrot.slane %v252_v56, 1 }
  0xf3   : > { %v254_v59 = vadd.f32 %v253_v57, %v252_v56 }
  0xf5   : > { %530 = vpush %v254_v59 }
 0x126   : > { %s531_s27 = spop %530 }
 0x127   : > { %s258_s28 = smul.f32 0.00024414063, %s531_s27 }
 0x129   : > { %v913_v60 = vstv %s258_s28 }
 0x12a   : > { %403 = vst [vmem:[%s139_s29] sm:$0x1] %v913_v60  ;;  %v260_v62 = vsub.f32 %v751_v0, %v913_v60  ;;  %v261_v63 = vsub.f32 %v754_v1, %v913_v60  ;;  %v262_v5 = vsub.f32 %v757_v2, %v913_v60  ;;  %v263_v6 = vsub.f32 %v760_v3, %v913_v60 }
 0x12b   : > { %v264_v14 = vsub.f32 %v769_v7, %v913_v60  ;;  %v265_v18 = vsub.f32 %v774_v10, %v913_v60  ;;  %v266_v2 = vsub.f32 %v779_v13, %v913_v60  ;;  %v267_v7 = vsub.f32 %v784_v16, %v913_v60 }
 0x12c   : > { %v292_v9 = vmul.f32 %v260_v62, %v260_v62  ;;  %v293_v11 = vmul.f32 %v261_v63, %v261_v63  ;;  %v294_v15 = vmul.f32 %v262_v5, %v262_v5  ;;  %v295_v20 = vmul.f32 %v263_v6, %v263_v6 }
 0x12d   : > { %v296_v24 = vmul.f32 %v264_v14, %v264_v14  ;;  %v297_v29 = vmul.f32 %v265_v18, %v265_v18  ;;  %v268_v33 = vsub.f32 %v789_v19, %v913_v60  ;;  %v298_v36 = vmul.f32 %v266_v2, %v266_v2 }
 0x12e   : > { %v324_v0 = vsel %vm183_vm0, %v292_v9, 0.0  ;;  %v325_v1 = vsel %vm183_vm0, %v293_v11, 0.0  ;;  %v327_v3 = vsel %vm183_vm0, %v294_v15, 0.0  ;;  %v329_v32 = vsel %vm183_vm0, %v295_v20, 0.0 }
 0x12f   : > { %v326_v23 = vadd.f32 %v325_v1, %v324_v0  ;;  %v331_v38 = vsel %vm183_vm0, %v296_v24, 0.0  ;;  %v269_v13 = vsub.f32 %v794_v22, %v913_v60  ;;  %v299_v42 = vmul.f32 %v267_v7, %v267_v7 }
 0x130   : > { %v333_v44 = vsel %vm183_vm0, %v297_v29, 0.0  ;;  %v270_v16 = vsub.f32 %v799_v25, %v913_v60  ;;  %v300_v47 = vmul.f32 %v268_v33, %v268_v33  ;;  %v335_v48 = vsel %vm183_vm0, %v298_v36, 0.0 }
 0x131   : > { %v328_v27 = vadd.f32 %v327_v3, %v326_v23  ;;  %v271_v19 = vsub.f32 %v804_v28, %v913_v60  ;;  %v301_v51 = vmul.f32 %v269_v13, %v269_v13  ;;  %v337_v53 = vsel %vm183_vm0, %v299_v42, 0.0 }
 0x132   : > { %v272_v22 = vsub.f32 %v809_v31, %v913_v60  ;;  %v302_v56 = vmul.f32 %v270_v16, %v270_v16  ;;  %v339_v57 = vsel %vm183_vm0, %v300_v47, 0.0  ;;  %v273_v25 = vsub.f32 %v814_v34, %v913_v60 }
 0x133   : > { %v330_v10 = vadd.f32 %v329_v32, %v328_v27  ;;  %v303_v62 = vmul.f32 %v271_v19, %v271_v19  ;;  %v341_v63 = vsel %vm183_vm0, %v301_v51, 0.0  ;;  %v274_v28 = vsub.f32 %v819_v37, %v913_v60 }
 0x134   : > { %v304_v6 = vmul.f32 %v272_v22, %v272_v22  ;;  %v343_v9 = vsel %vm183_vm0, %v302_v56, 0.0  ;;  %v275_v31 = vsub.f32 %v824_v40, %v913_v60  ;;  %v305_v14 = vmul.f32 %v273_v25, %v273_v25 }
 0x135   : > { %v332_v41 = vadd.f32 %v331_v38, %v330_v10  ;;  %v345_v15 = vsel %vm183_vm0, %v303_v62, 0.0  ;;  %v276_v34 = vsub.f32 %v829_v43, %v913_v60  ;;  %v306_v20 = vmul.f32 %v274_v28, %v274_v28 }
 0x136   : > { %v347_v0 = vsel %vm183_vm0, %v304_v6, 0.0  ;;  %v277_v37 = vsub.f32 %v834_v46, %v913_v60  ;;  %v307_v23 = vmul.f32 %v275_v31, %v275_v31  ;;  %v349_v2 = vsel %vm183_vm0, %v305_v14, 0.0 }
 0x137   : > { %v334_v45 = vadd.f32 %v333_v44, %v332_v41  ;;  %v278_v40 = vsub.f32 %v839_v49, %v913_v60  ;;  %v308_v3 = vmul.f32 %v276_v34, %v276_v34  ;;  %v351_v27 = vsel %vm183_vm0, %v306_v20, 0.0 }
 0x138   : > { %v279_v43 = vsub.f32 %v844_v52, %v913_v60  ;;  %v309_v29 = vmul.f32 %v277_v37, %v277_v37  ;;  %v353_v32 = vsel %vm183_vm0, %v307_v23, 0.0  ;;  %v280_v46 = vsub.f32 %v849_v55, %v913_v60 }
 0x139   : > { %v336_v50 = vadd.f32 %v335_v48, %v334_v45  ;;  %v310_v33 = vmul.f32 %v278_v40, %v278_v40  ;;  %v355_v36 = vsel %vm183_vm0, %v308_v3, 0.0  ;;  %v281_v49 = vsub.f32 %v854_v58, %v913_v60 }
 0x13a   : > { %v311_v41 = vmul.f32 %v279_v43, %v279_v43  ;;  %v357_v13 = vsel %vm183_vm0, %v309_v29, 0.0  ;;  %v282_v52 = vsub.f32 %v859_v61, %v913_v60  ;;  %v312_v44 = vmul.f32 %v280_v46, %v280_v46 }
 0x13b   : > { %v338_v54 = vadd.f32 %v337_v53, %v336_v50  ;;  %v359_v45 = vsel %vm183_vm0, %v310_v33, 0.0  ;;  %v283_v55 = vsub.f32 %v864_v4, %v913_v60  ;;  %v313_v47 = vmul.f32 %v281_v49, %v281_v49 }
 0x13c   : > { %v361_v48 = vsel %vm183_vm0, %v311_v41, 0.0  ;;  %v284_v58 = vsub.f32 %v869_v8, %v913_v60  ;;  %v314_v19 = vmul.f32 %v282_v52, %v282_v52  ;;  %v363_v51 = vsel %vm183_vm0, %v312_v44, 0.0 }
 0x13d   : > { %v340_v59 = vadd.f32 %v339_v57, %v338_v54  ;;  %v285_v61 = vsub.f32 %v874_v12, %v913_v60  ;;  %v315_v54 = vmul.f32 %v283_v55, %v283_v55  ;;  %v365_v22 = vsel %vm183_vm0, %v313_v47, 0.0 }
 0x13e   : > { %v286_v4 = vsub.f32 %v879_v17, %v913_v60  ;;  %v316_v57 = vmul.f32 %v284_v58, %v284_v58  ;;  %v287_v8 = vsub.f32 %v884_v21, %v913_v60  ;;  %v288_v12 = vsub.f32 %v889_v26, %v913_v60 }
 0x13f   : > { %v342_v5 = vadd.f32 %v341_v63, %v340_v59  ;;  %v367_v59 = vsel %vm183_vm0, %v314_v19, 0.0  ;;  %v317_v62 = vmul.f32 %v285_v61, %v285_v61  ;;  %v369_v63 = vsel %vm183_vm0, %v315_v54, 0.0 }
 0x140   : > { %v318_v28 = vmul.f32 %v286_v4, %v286_v4  ;;  %v371_v6 = vsel %vm183_vm0, %v316_v57, 0.0  ;;  %v289_v17 = vsub.f32 %v894_v30, %v913_v60  ;;  %v290_v21 = vsub.f32 %v899_v35, %v913_v60 }
 0x141   : > { %v344_v11 = vadd.f32 %v343_v9, %v342_v5  ;;  %v373_v31 = vsel %vm183_vm0, %v317_v62, 0.0  ;;  %v291_v26 = vsub.f32 %v904_v39, %v913_v60 }
 0x142   : > { %v321_v20 = vmul.f32 %v289_v17, %v289_v17  ;;  %v322_v30 = vmul.f32 %v290_v21, %v290_v21 }
 0x143   : > { %v346_v18 = vadd.f32 %v345_v15, %v344_v11  ;;  %v319_v11 = vmul.f32 %v287_v8, %v287_v8  ;;  %v320_v15 = vmul.f32 %v288_v12, %v288_v12 }
 0x144   : > { %v381_v35 = vsel %vm183_vm0, %v321_v20, 0.0  ;;  %v383_v40 = vsel %vm183_vm0, %v322_v30, 0.0 }
 0x145   : > { %v348_v1 = vadd.f32 %v347_v0, %v346_v18  ;;  %v375_v18 = vsel %vm183_vm0, %v318_v28, 0.0  ;;  %v377_v0 = vsel %vm183_vm0, %v319_v11, 0.0  ;;  %v379_v37 = vsel %vm183_vm0, %v320_v15, 0.0 }
 0x147   : > { %v350_v24 = vadd.f32 %v349_v2, %v348_v1  ;;  %v323_v2 = vmul.f32 %v291_v26, %v291_v26 }
 0x149   : > { %v352_v7 = vadd.f32 %v351_v27, %v350_v24  ;;  %v385_v60 = vsel %vm183_vm0, %v323_v2, 0.0 }
 0x14b   : > { %v354_v10 = vadd.f32 %v353_v32, %v352_v7 }
 0x14d   : > { %v356_v38 = vadd.f32 %v355_v36, %v354_v10 }
 0x14f   : > { %v358_v42 = vadd.f32 %v357_v13, %v356_v38 }
 0x151   : > { %v360_v16 = vadd.f32 %v359_v45, %v358_v42 }
 0x153   : > { %v362_v50 = vadd.f32 %v361_v48, %v360_v16 }
 0x155   : > { %v364_v53 = vadd.f32 %v363_v51, %v362_v50 }
 0x157   : > { %v366_v56 = vadd.f32 %v365_v22, %v364_v53 }
 0x159   : > { %v368_v25 = vadd.f32 %v367_v59, %v366_v56 }
 0x15b   : > { %v370_v5 = vadd.f32 %v369_v63, %v368_v25 }
 0x15d   : > { %v372_v9 = vadd.f32 %v371_v6, %v370_v5 }
 0x15f   : > { %v374_v14 = vadd.f32 %v373_v31, %v372_v9 }
 0x161   : > { %v376_v34 = vadd.f32 %v375_v18, %v374_v14 }
 0x163   : > { %v378_v1 = vadd.f32 %v377_v0, %v376_v34 }
 0x165   : > { %v380_v23 = vadd.f32 %v379_v37, %v378_v1 }
 0x167   : > { %v382_v24 = vadd.f32 %v381_v35, %v380_v23 }
 0x169   : > { %v384_v39 = vadd.f32 %v383_v40, %v382_v24 }
 0x16b   : > { %v386_v3 = vadd.f32 %v385_v60, %v384_v39 }
 0x16d   : > { %387 = vadd.xlane.f32.xlu0 %v386_v3 }
 0x1fa   : > { %v388_v27 = vpop.xlane.xlu0 %387 }
 0x1fb   : > { %v389_v7 = vrot.slane %v388_v27, 4 }
 0x1fd   : > { %v390_v43 = vadd.f32 %v389_v7, %v388_v27 }
 0x1ff   : > { %v391_v29 = vrot.slane %v390_v43, 2 }
 0x200   : > { %595 = shalt.err (!%p592_p3)
}
 0x201   : > { %s596_s21 = scalar_lea.hbm %s1021_s5, 16  ;;  %s600_s24 = scalar_lea.hbm %s1093_s1, 32 }
 0x202   : > { %p597_p4 = scmp.ne.s32.totalorder %s1021_s5, %s596_s21  ;;  %p601_p9 = scmp.lt.u32.totalorder %s1021_s5, %s1093_s1 }
 0x203   : > { %p602_p10 = scmp.lt.u32.totalorder %s600_s24, %s596_s21  ;;  %p604_p12 = scmp.lt.u32.totalorder %s596_s21, %s1021_s5 }
 0x204   : > { %p598_p7 = pnand %p597_p4, %p733_p5 }
 0x205   : > { %p603_p11 = por %p602_p10, %p601_p9 }
 0x206   : > { %p599_p8 = pneg %p598_p7 }
 0x207   : > { %p605_p13 = por %p604_p12, %p603_p11 }
 0x209   : > { %p606_p0 = pnand %p605_p13, %p599_p8 }
 0x20b   : > { %609 = shalt.err (!%p606_p0)
}
 0x20c   : > { %536 = dma.vmem_to_hbm [thread:$0]  (%p733_p5), %s424_s6, 16, %s1021_s5, %s407_s7   ;;  %v392_v32 = vadd.f32 %v391_v29, %v390_v43 }
 0x20d   : > { %s145_s4 = scalar_lea.vmem [#allocation4], %s911_s26  ;;  %s1051_s14 = scalar_lea.hbm %s1094_s2, %s525_s30 }
 0x20e   : > { %v393_v10 = vrot.slane %v392_v32, 1  ;;  %s436_s8 = sshll.u32 %s145_s4, 4  ;;  %s411_s16 = scalar_lea.sflag [#allocation5], %s911_s26  ;;  %s1044_s8 = int_to_ptr.vmem [resolvable:$true] %s436_s8 }
 0x20f   : > { %s610_s17 = scalar_lea.vmem %s1044_s8, 16  ;;  %s679_s21 = smov [#allocation4]  }
 0x210   : > { %v394_v46 = vadd.f32 %v393_v10, %v392_v32  ;;  %p611_p1 = scmp.ne.s32.totalorder %s1044_s8, %s610_s17  ;;  %s614_s22 = sshll.u32 %s679_s21, 4  ;;  %s615_s22 = int_to_ptr.vmem [resolvable:$false] %s614_s22 }
 0x211   : > { %s616_s23 = scalar_lea.vmem %s615_s22, 32  ;;  %p617_p4 = scmp.lt.s32.totalorder %s1044_s8, %s615_s22 }
 0x212   : > { %532 = vpush %v394_v46  ;;  %p612_p2 = pnand %p611_p1, %p733_p5  ;;  %p618_p7 = scmp.lt.s32.totalorder %s616_s23, %s610_s17 }
 0x214   : > { %p613_p3 = pneg %p612_p2  ;;  %p619_p8 = por %p618_p7, %p617_p4 }
 0x216   : > { %p620_p9 = pnand %p619_p8, %p613_p3 }
 0x243   : > { %s533_s28 = spop %532 }
 0x244   : > { %s398_s29 = smul.f32 0.00024414063, %s533_s28 }
 0x246   : > { %s399_s3 = sadd.f32 1e-05, %s398_s29 }
 0x248   : > { %v400_v33 = vstv %s399_s3 }
 0x249   : > { %580 = vrsqrt.f32 %v400_v33 }
 0x253   : > { %v581_v36 = vpop.eup %580 }
 0x254   : > { %534 = vpush %v581_v36 }
 0x285   : > { %s535_s5 = spop %534 }
 0x286   : > { %v404_v38 = vstv %s535_s5 }
 0x287   : > { %405 = vst [vmem:[%s145_s4] sm:$0x1] %v404_v38 }
 0x288   : > { %623 = shalt.err (!%p620_p9)
}
 0x289   : > { %s624_s13 = scalar_lea.hbm %s1051_s14, 16  ;;  %s628_s24 = scalar_lea.hbm %s1094_s2, 32 }
 0x28a   : > { %p625_p10 = scmp.ne.s32.totalorder %s1051_s14, %s624_s13  ;;  %p629_p13 = scmp.lt.u32.totalorder %s1051_s14, %s1094_s2 }
 0x28b   : > { %p630_p0 = scmp.lt.u32.totalorder %s628_s24, %s624_s13  ;;  %p632_p2 = scmp.lt.u32.totalorder %s624_s13, %s1051_s14 }
 0x28c   : > { %p626_p11 = pnand %p625_p10, %p733_p5 }
 0x28d   : > { %p631_p1 = por %p630_p0, %p629_p13 }
 0x28e   : > { %p627_p12 = pneg %p626_p11 }
 0x28f   : > { %p633_p3 = por %p632_p2, %p631_p1 }
 0x291   : > { %p634_p4 = pnand %p633_p3, %p627_p12 }
 0x293   : > { %637 = shalt.err (!%p634_p4)
}
 0x294   : > { %537 = dma.vmem_to_hbm [thread:$0]  (%p733_p5), %s1044_s8, 16, %s1051_s14, %s411_s16  }
 0x295 PF: > { %p547_p7 = scmp.ge.s32.totalorder %s676_s12, 2  ;;  %s448_s28 = sand.u32 1, %s664_s9  }
 0x296   : > { %s449_s29 = scalar_lea.sflag [#allocation3], %s448_s28 }
 0x297   : > { %p541_p8 = pnand %p547_p7, %p737_p6 }
 0x299   : > { %655 = dma.done.wait (!%p541_p8), %s449_s29, 16  }
 0x29a   : > { %657 = vsyncadd (!%p541_p8), %s449_s29, 4294967280  ;;  %s457_s3 = scalar_lea.sflag [#allocation5], %s448_s28 }
 0x29b   : > { %659 = dma.done.wait (!%p541_p8), %s457_s3, 16  }
 0x29c   : > { %661 = vsyncadd (!%p541_p8), %s457_s3, 4294967280  ;;  %p16_p5 = scmp.ge.s32.totalorder %s720_s15, 4   ;;  %s1097_s9 = smov %s668_s10 }
 0x29d   : > { %s1098_s10 = smov %s672_s11  ;;  %s1099_s11 = smov %s731_s18 }
 0x29e   : > { %s1100_s12 = smov %s720_s15  ;;  %18 = sbr.rel (!%p16_p5) target bundleno = 5 (0x5), region = 76 }
 0x2a5   :  { %461 = vsyncpa [#allocation3], 1 }
 0x2a6   :  { %463 = vsyncpa [#allocation3 + $0x1], 1 }
 0x2a7   :  { %464 = vsyncpa [#allocation5], 1 }
 0x2a8   :  { %466 = vsyncpa [#allocation5 + $0x1], 1 }

</bundles_post_ra>
